<compile_context>
chip_gen: v6e
topology: v6e:2x2x1
jax: 0.10.0
libtpu: 0.0.40
codegen_flags: <defaults>
</compile_context>

<pallas_src>
from functools import partial

import jax
import jax.numpy as jnp
from jax import lax
from jax.experimental import pallas as pl
from jax.experimental.pallas import tpu as pltpu

LANES = 128
SLAB_WIDTH = 1024          # 8 * 128 lanes -> wide, unmasked vector stores
MAX_BLOCK_ROWS = 256       # (256, 1024) f32 = 1 MiB per ref per buffer


def _focal_pow(base, gamma):
    """base**gamma, specialized to repeated multiplication for small ints."""
    g = float(gamma)
    if g == int(g) and 0 <= int(g) <= 4:
        gi = int(g)
        if gi == 0:
            return jnp.ones_like(base)
        r = base
        for _ in range(gi - 1):
            r = r * base
        return r
    return jnp.power(base, g)


def _focal_elementwise(x, y, *, alpha, gamma, reduced_threshold):
    # Numerically-stable BCE with logits: max(x,0) - x*y + log1p(exp(-|x|))
    logpt = jnp.maximum(x, 0.0) - x * y + jnp.log1p(jnp.exp(-jnp.abs(x)))
    pt = jnp.exp(-logpt)

    if reduced_threshold is None:
        focal_term = _focal_pow(1.0 - pt, gamma)
    else:
        focal_term = _focal_pow((1.0 - pt) / reduced_threshold, gamma)
        focal_term = jnp.where(pt < reduced_threshold, 1.0, focal_term)

    loss = focal_term * logpt
    if alpha is not None:
        loss = loss * (alpha * y + (1.0 - alpha) * (1.0 - y))
    return loss, focal_term


def _focal_kernel(x_ref, y_ref, loss_ref, *, alpha, gamma, reduced_threshold):
    """normalized=False variant: loss only, no focal_term HBM traffic."""
    x = x_ref[...].astype(jnp.float32)
    y = y_ref[...].astype(jnp.float32)
    loss, _ = _focal_elementwise(
        x, y, alpha=alpha, gamma=gamma, reduced_threshold=reduced_threshold)
    loss_ref[...] = loss.astype(loss_ref.dtype)


def _focal_kernel_normalized(x_ref, y_ref, loss_ref, psum_ref, *, alpha, gamma,
                             reduced_threshold, n_valid, needs_mask):
    """normalized=True variant: loss + fused per-block focal_term partial sum."""
    x = x_ref[...].astype(jnp.float32)
    y = y_ref[...].astype(jnp.float32)
    loss, focal_term = _focal_elementwise(
        x, y, alpha=alpha, gamma=gamma, reduced_threshold=reduced_threshold)
    loss_ref[...] = loss.astype(loss_ref.dtype)

    if needs_mask:
        # Mask padded / out-of-bounds tail elements out of the reduction.
        br, w = x.shape
        row = lax.broadcasted_iota(jnp.int32, (br, w), 0) + pl.program_id(0) * br
        col = lax.broadcasted_iota(jnp.int32, (br, w), 1)
        idx = row * w + col
        focal_term = jnp.where(idx < n_valid, focal_term, 0.0)

    bsum = jnp.sum(focal_term)
    # Tiny (1, 8, 128) tile per block; wrapper reads [:, 0, 0].
    psum_ref[...] = jnp.full(psum_ref.shape, bsum, dtype=jnp.float32)


def focal_loss_with_logits(
    y_pred,
    y_true,
    *,
    alpha=None,
    gamma=2.0,
    normalized=False,
    reduced_threshold=None,
    eps=1e-6,
):
    """Pallas equivalent of focal_loss_with_logits with reduction='none'."""
    orig_shape = y_pred.shape
    assert y_true.shape == orig_shape, "binary mode expects matching shapes"

    out_dtype = (y_pred.dtype if jnp.issubdtype(y_pred.dtype, jnp.floating)
                 else jnp.float32)

    n = 1
    for d in orig_shape:
        n *= int(d)

    W = SLAB_WIDTH
    pad = (-n) % W
    x_flat = jnp.reshape(y_pred, (-1,))
    t_flat = jnp.reshape(y_true, (-1,))
    if pad:
        x_flat = jnp.pad(x_flat, (0, pad))
        t_flat = jnp.pad(t_flat, (0, pad))
    rows = (n + pad) // W
    x2d = jnp.reshape(x_flat, (rows, W))
    t2d = jnp.reshape(t_flat, (rows, W))

    # Full-extent block for small inputs; 1 MiB-class blocks otherwise.
    block_rows = rows if rows <= MAX_BLOCK_ROWS else MAX_BLOCK_ROWS
    num_blocks = pl.cdiv(rows, block_rows)
    grid = (num_blocks,)
    blk = pl.BlockSpec((block_rows, W), lambda i: (i, 0))
    cparams = pltpu.CompilerParams(dimension_semantics=("parallel",))

    if not normalized:
        kernel = partial(_focal_kernel, alpha=alpha, gamma=gamma,
                         reduced_threshold=reduced_threshold)
        loss2d = pl.pallas_call(
            kernel,
            grid=grid,
            in_specs=[blk, blk],
            out_specs=blk,
            out_shape=jax.ShapeDtypeStruct((rows, W), out_dtype),
            compiler_params=cparams,
        )(x2d, t2d)
        loss = jnp.reshape(loss2d, (-1,))[:n]
        return jnp.reshape(loss, orig_shape)

    # normalized=True: fused focal_term reduction (per-block partial sums).
    needs_mask = (pad != 0) or (rows % block_rows != 0)
    kernel = partial(_focal_kernel_normalized, alpha=alpha, gamma=gamma,
                     reduced_threshold=reduced_threshold,
                     n_valid=n, needs_mask=needs_mask)
    psum_spec = pl.BlockSpec((1, 8, LANES), lambda i: (i, 0, 0))
    loss2d, psums = pl.pallas_call(
        kernel,
        grid=grid,
        in_specs=[blk, blk],
        out_specs=[blk, psum_spec],
        out_shape=(
            jax.ShapeDtypeStruct((rows, W), out_dtype),
            jax.ShapeDtypeStruct((num_blocks, 8, LANES), jnp.float32),
        ),
        compiler_params=cparams,
    )(x2d, t2d)

    norm = jnp.maximum(jnp.sum(psums[:, 0, 0]), eps)
    loss = jnp.reshape(loss2d, (-1,))[:n] / norm
    return jnp.reshape(loss, orig_shape).astype(out_dtype)


class FocalLoss:
    """JAX/Pallas port of the PyTorch FocalLoss module (binary mode)."""

    def __init__(self, mode: str, alpha=None, gamma=2.0, normalized=False,
                 reduced_threshold=None):
        assert mode == "binary"
        self.mode = mode
        self.focal_loss_fn = partial(
            focal_loss_with_logits,
            alpha=alpha,
            gamma=gamma,
            normalized=normalized,
            reduced_threshold=reduced_threshold,
        )

    def __call__(self, y_pred, y_true):
        return self.focal_loss_fn(y_pred, y_true)


def _reference_focal(y_pred, y_true, alpha=None, gamma=2.0, normalized=False,
                     reduced_threshold=None, eps=1e-6):
    x = y_pred.astype(jnp.float32)
    y = y_true.astype(jnp.float32)
    logpt = jnp.maximum(x, 0.0) - x * y + jnp.log1p(jnp.exp(-jnp.abs(x)))
    pt = jnp.exp(-logpt)
    if reduced_threshold is None:
        ft = (1.0 - pt) ** gamma
    else:
        ft = jnp.where(pt < reduced_threshold, 1.0,
                       ((1.0 - pt) / reduced_threshold) ** gamma)
    loss = ft * logpt
    if alpha is not None:
        loss = loss * (alpha * y + (1 - alpha) * (1 - y))
    if normalized:
        loss = loss / jnp.maximum(jnp.sum(ft), eps)
    return loss


if __name__ == "__main__":
    key = jax.random.PRNGKey(0)
    k1, k2 = jax.random.split(key)

    N, C, H, W_ = 2, 4, 16, 16
    y_pred = jax.random.normal(k1, (N, C, H, W_), dtype=jnp.float32) * 2.0
    y_true = (jax.random.uniform(k2, (N, C, H, W_)) > 0.5).astype(jnp.float32)

    # Plain path (no normalization, no alpha).
    loss_fn = FocalLoss(mode="binary", alpha=None, gamma=2.0, normalized=False)
    loss = jax.block_until_ready(loss_fn(y_pred, y_true))
    ref = _reference_focal(y_pred, y_true, alpha=None, gamma=2.0)
    assert loss.shape == (N, C, H, W_)
    assert jnp.allclose(loss, ref, atol=1e-5, rtol=1e-5)

    # alpha / reduced_threshold / normalized path (fused in-kernel reduction).
    loss2 = FocalLoss("binary", alpha=0.25, gamma=2.0, normalized=True,
                      reduced_threshold=0.5)(y_pred, y_true)
    loss2 = jax.block_until_ready(loss2)
    ref2 = _reference_focal(y_pred, y_true, alpha=0.25, gamma=2.0,
                            normalized=True, reduced_threshold=0.5)
    assert jnp.allclose(loss2, ref2, atol=1e-5, rtol=1e-5)

    # Non-divisible shape: exercises padding + in-kernel tail masking.
    k3, k4 = jax.random.split(k2)
    yp = jax.random.normal(k3, (3, 5, 17, 13), dtype=jnp.float32)
    yt = (jax.random.uniform(k4, (3, 5, 17, 13)) > 0.5).astype(jnp.float32)
    l3 = jax.block_until_ready(
        focal_loss_with_logits(yp, yt, alpha=0.25, gamma=2.0, normalized=True))
    r3 = _reference_focal(yp, yt, alpha=0.25, gamma=2.0, normalized=True)
    assert jnp.allclose(l3, r3, atol=1e-5, rtol=1e-5)

    print("KERNEL_OK")
</pallas_src>

<mosaic_0001>
module attributes {stable_mosaic.version = 11 : i64} {
  func.func @_focal_kernel(%arg0: i32, %arg1: memref<2x1024xf32, #tpu.memory_space<vmem>>, %arg2: memref<2x1024xf32, #tpu.memory_space<vmem>>, %arg3: memref<2x1024xf32, #tpu.memory_space<vmem>>) attributes {dimension_semantics = [#tpu.dimension_semantics<parallel>], iteration_bounds = array<i64: 1>, scalar_prefetch = 0 : i64, scratch_operands = 0 : i64, tpu.core_type = #tpu.core_type<tc>, window_params = [{transform_indices = @transform_0, window_bounds = array<i64: 2, 1024>}, {transform_indices = @transform_1, window_bounds = array<i64: 2, 1024>}, {transform_indices = @transform_2, window_bounds = array<i64: 2, 1024>}]} {
    %c0 = arith.constant 0 : index
    %c0_0 = arith.constant 0 : index
    %0 = vector.load %arg1[%c0, %c0_0] : memref<2x1024xf32, #tpu.memory_space<vmem>>, vector<2x1024xf32>
    %c0_1 = arith.constant 0 : index
    %c0_2 = arith.constant 0 : index
    %1 = vector.load %arg2[%c0_1, %c0_2] : memref<2x1024xf32, #tpu.memory_space<vmem>>, vector<2x1024xf32>
    %cst = arith.constant 0.000000e+00 : f32
    %2 = vector.broadcast %cst : f32 to vector<2x1024xf32>
    %3 = arith.maximumf %0, %2 : vector<2x1024xf32>
    %4 = arith.mulf %0, %1 : vector<2x1024xf32>
    %5 = arith.subf %3, %4 : vector<2x1024xf32>
    %6 = math.absf %0 : vector<2x1024xf32>
    %cst_3 = arith.constant 0.000000e+00 : f32
    %7 = vector.broadcast %cst_3 : f32 to vector<2x1024xf32>
    %8 = arith.subf %7, %6 : vector<2x1024xf32>
    %9 = math.exp %8 : vector<2x1024xf32>
    %10 = math.log1p %9 : vector<2x1024xf32>
    %11 = arith.addf %5, %10 : vector<2x1024xf32>
    %cst_4 = arith.constant 0.000000e+00 : f32
    %12 = vector.broadcast %cst_4 : f32 to vector<2x1024xf32>
    %13 = arith.subf %12, %11 : vector<2x1024xf32>
    %14 = math.exp %13 : vector<2x1024xf32>
    %cst_5 = arith.constant 1.000000e+00 : f32
    %15 = vector.broadcast %cst_5 : f32 to vector<2x1024xf32>
    %16 = arith.subf %15, %14 : vector<2x1024xf32>
    %17 = arith.mulf %16, %16 : vector<2x1024xf32>
    %18 = arith.mulf %17, %11 : vector<2x1024xf32>
    %c0_6 = arith.constant 0 : index
    %c0_7 = arith.constant 0 : index
    %19 = vector.load %arg3[%c0_6, %c0_7] : memref<2x1024xf32, #tpu.memory_space<vmem>>, vector<2x1024xf32>
    tpu.vector_store %arg3[%c0_6, %c0_7], %18 {strides = array<i32>} : memref<2x1024xf32, #tpu.memory_space<vmem>>, vector<2x1024xf32>,
    return
  }
  func.func @transform_0(%arg0: i32) -> (i32, i32) {
    %c0_i32 = arith.constant 0 : i32
    %c0_i32_0 = arith.constant 0 : i32
    return %arg0, %c0_i32 : i32, i32
  }
  func.func @transform_1(%arg0: i32) -> (i32, i32) {
    %c0_i32 = arith.constant 0 : i32
    %c0_i32_0 = arith.constant 0 : i32
    return %arg0, %c0_i32 : i32, i32
  }
  func.func @transform_2(%arg0: i32) -> (i32, i32) {
    %c0_i32 = arith.constant 0 : i32
    %c0_i32_0 = arith.constant 0 : i32
    return %arg0, %c0_i32 : i32, i32
  }
}

</mosaic_0001>

<bundles_post_ra>
// kernel: tpu_custom_call.1
= control target key start
LH: loop header
LB: loop body
LE: loop exit
PB: predicated region body
PF: predicated region fallthrough
CT: control target
= control target key end

     0   :  { %7 = vsyncpa [#allocation3], 0  ;;  %s212_s0 = inlined_call_operand.hbm [shape: f32[2,1024], index: 0, kind: input, shape index: {}]   ;;  %s213_s1 = inlined_call_operand.hbm [shape: f32[2,1024], index: 1, kind: input, shape index: {}]   ;;  %s214_s2 = inlined_call_operand.hbm [shape: f32[2,1024], index: 2, kind: output, shape index: {}]  }
   0x1   :  { %8 = vsyncpa [#allocation6], 0 }
   0x2   :  { %9 = vsyncpa [#allocation4], 0  ;;  %s185_s9 = smov [#allocation2]   ;;  %s186_s11 = smov [#allocation5]  }
   0x3   :  { %s16_s10 = sshll.u32 %s185_s9, 4  ;;  %s26_s12 = sshll.u32 %s186_s11, 4  ;;  %s17_s10 = int_to_ptr.vmem [resolvable:$true] %s16_s10  ;;  %s27_s12 = int_to_ptr.vmem [resolvable:$true] %s26_s12 }
   0x4   :  { %s127_s13 = scalar_lea.vmem %s17_s10, 256  ;;  %p132_p1 = scmp.lt.s32.totalorder %s17_s10, %s17_s10 }
   0x5   :  { %p128_p0 = scmp.ne.s32.totalorder %s17_s10, %s127_s13  ;;  %p133_p2 = scmp.lt.s32.totalorder %s127_s13, %s127_s13 }
   0x7   :  { %p134_p3 = por %p133_p2, %p132_p1 }
   0x9   :  { %p135_p4 = pnand %p134_p3, %p128_p0 }
   0xb   :  { %138 = shalt.err (!%p135_p4)
}
   0xc   :  { %19 = dma.hbm_to_vmem [thread:$0]  %s212_s0, 256, %s17_s10, [#allocation3]  }
   0xd   :  { %s147_s16 = scalar_lea.vmem %s27_s12, 256  ;;  %p152_p6 = scmp.lt.s32.totalorder %s27_s12, %s27_s12 }
   0xe   :  { %p148_p5 = scmp.ne.s32.totalorder %s27_s12, %s147_s16  ;;  %p153_p7 = scmp.lt.s32.totalorder %s147_s16, %s147_s16 }
  0x10   :  { %p154_p8 = por %p153_p7, %p152_p6 }
  0x12   :  { %p155_p9 = pnand %p154_p8, %p148_p5 }
  0x14   :  { %158 = shalt.err (!%p155_p9)
}
  0x15   :  { %29 = dma.hbm_to_vmem [thread:$0]  %s213_s1, 256, %s27_s12, [#allocation6]  }
  0x16   :  { %179 = dma.done.wait [#allocation3], 256  }
  0x17   :  { %180 = vsyncadd [#allocation3], 4294967040 }
  0x18   :  { %181 = dma.done.wait [#allocation6], 256  }
  0x19   :  { %182 = vsyncadd [#allocation6], 4294967040  ;;  %v36_v0 = vld [vmem:[#allocation2] sm:$0xff]  ;;  %v37_v1 = vld [vmem:[#allocation2 + $0x8] sm:$0xff]  ;;  %s187_s0 = smov [#allocation7]  }
  0x1a   :  { %v46_v2 = vand.u32 2147483647, %v36_v0  ;;  %v47_v3 = vand.u32 2147483647, %v37_v1  ;;  %v38_v14 = vld [vmem:[#allocation5] sm:$0xff]  ;;  %v39_v15 = vld [vmem:[#allocation5 + $0x8] sm:$0xff] }
  0x1b   :  { %v40_v17 = vmax.f32 %v36_v0, 0.0  ;;  %v42_v18 = vmul.f32 %v38_v14, %v36_v0  ;;  %v41_v21 = vmax.f32 %v37_v1, 0.0  ;;  %v43_v22 = vmul.f32 %v39_v15, %v37_v1  ;;  %s94_s1 = sshll.u32 %s187_s0, 4  ;;  %s95_s1 = int_to_ptr.vmem [resolvable:$true] %s94_s1 }
  0x1c   :  { %v48_v4 = vsub.f32 0.0, %v46_v2  ;;  %v49_v5 = vsub.f32 0.0, %v47_v3  ;;  %s159_s19 = scalar_lea.vmem %s95_s1, 256  ;;  %p164_p11 = scmp.lt.s32.totalorder %s95_s1, %s95_s1 }
  0x1d   :  { %v44_v26 = vsub.f32 %v40_v17, %v42_v18  ;;  %v45_v30 = vsub.f32 %v41_v21, %v43_v22  ;;  %p160_p10 = scmp.ne.s32.totalorder %s95_s1, %s159_s19  ;;  %p165_p12 = scmp.lt.s32.totalorder %s159_s19, %s159_s19 }
  0x1e   :  { %v50_v6 = vmul.f32 1.442695, %v48_v4  ;;  %v52_v7 = vmul.f32 1.442695, %v49_v5 }
  0x1f   :  { %p166_p13 = por %p165_p12, %p164_p11 }
  0x20   :  { %107 = vpow2.f32 %v50_v6 }
  0x21   :  { %109 = vpow2.f32 %v52_v7  ;;  %p167_p0 = pnand %p166_p13, %p160_p10 }
  0x2d   :  { %v108_v8 = vpop.eup %107 }
  0x2e   :  { %v110_v9 = vpop.eup %109  ;;  %v54_v10 = vadd.f32 1.0, %v108_v8  ;;  %v57_v12 = vmul.f32 -0.5, %v108_v8  ;;  %v60_v19 = vand.u32 2147483647, %v108_v8 }
  0x2f   :  { %v63_v11 = vadd.f32 1.0, %v110_v9  ;;  %v66_v13 = vmul.f32 -0.5, %v110_v9  ;;  %v69_v23 = vand.u32 2147483647, %v110_v9 }
  0x30   :  { %111 = vlog2.f32 %v54_v10  ;;  %v58_v16 = vadd.f32 1.0, %v57_v12  ;;  %vm61_vm0 = vcmp.lt.f32.partialorder %v60_v19, 0.0004427343 }
  0x31   :  { %113 = vlog2.f32 %v63_v11  ;;  %v67_v20 = vadd.f32 1.0, %v66_v13  ;;  %vm70_vm1 = vcmp.lt.f32.partialorder %v69_v23, 0.0004427343 }
  0x32   :  { %v59_v24 = vmul.f32 %v108_v8, %v58_v16 }
  0x33   :  { %v68_v27 = vmul.f32 %v110_v9, %v67_v20 }
  0x3d   :  { %v112_v25 = vpop.eup %111 }
  0x3e   :  { %v114_v28 = vpop.eup %113  ;;  %v56_v29 = vmul.f32 0.6931472, %v112_v25 }
  0x3f   :  { %v65_v31 = vmul.f32 0.6931472, %v114_v28 }
  0x40   :  { %v62_v32 = vsel %vm61_vm0, %v59_v24, %v56_v29 }
  0x41   :  { %v72_v33 = vadd.f32 %v62_v32, %v44_v26  ;;  %v71_v34 = vsel %vm70_vm1, %v68_v27, %v65_v31 }
  0x42   :  { %v73_v35 = vadd.f32 %v71_v34, %v45_v30 }
  0x43   :  { %v74_v36 = vsub.f32 0.0, %v72_v33 }
  0x44   :  { %v75_v37 = vsub.f32 0.0, %v73_v35 }
  0x45   :  { %v76_v38 = vmul.f32 1.442695, %v74_v36 }
  0x46   :  { %v78_v39 = vmul.f32 1.442695, %v75_v37 }
  0x47   :  { %115 = vpow2.f32 %v76_v38 }
  0x48   :  { %117 = vpow2.f32 %v78_v39 }
  0x54   :  { %v116_v40 = vpop.eup %115 }
  0x55   :  { %v118_v41 = vpop.eup %117  ;;  %v80_v42 = vsub.f32 1.0, %v116_v40 }
  0x56   :  { %v81_v43 = vsub.f32 1.0, %v118_v41 }
  0x57   :  { %v82_v44 = vmul.f32 %v80_v42, %v80_v42 }
  0x58   :  { %v83_v45 = vmul.f32 %v81_v43, %v81_v43 }
  0x59   :  { %v84_v46 = vmul.f32 %v82_v44, %v72_v33 }
  0x5a   :  { %v85_v47 = vmul.f32 %v83_v45, %v73_v35 }
  0x5b   :  { %86 = vst [vmem:[#allocation7] sm:$0xff] %v84_v46 }
  0x5c   :  { %87 = vst [vmem:[#allocation7 + $0x8] sm:$0xff] %v85_v47 }
  0x5d   :  { %170 = shalt.err (!%p167_p0)
}
  0x5e   :  { %97 = dma.vmem_to_hbm [thread:$0]  %s95_s1, 256, %s214_s2, [#allocation4]  }
  0x5f   :  { %183 = dma.done.wait [#allocation4], 256  }
  0x60   :  { %184 = vsyncadd [#allocation4], 4294967040 }
  0x61   :  { %101 = vsyncpa [#allocation3], 1 }
  0x62   :  { %102 = vsyncpa [#allocation6], 1 }
  0x63   :  { %103 = vsyncpa [#allocation4], 1 }

</bundles_post_ra>
